<compile_context>
chip_gen: v7x
topology: tpu7x:2x2x1
jax: 0.10.0
libtpu: 0.0.40
codegen_flags: <defaults>
</compile_context>

<pallas_src>
import jax
import jax.numpy as jnp
from jax.experimental import pallas as pl
from jax.experimental.pallas import tpu as pltpu


def dnn_kernel(x_ref, w1_ref, b1_ref, w2_ref, b2_ref, w3_ref, b3_ref,
               w4_ref, b4_ref, o_ref):
    # Layer 1: Linear(30 -> 32) + ReLU   (dropout = identity in eval)
    h = jnp.dot(x_ref[...], w1_ref[...], preferred_element_type=jnp.float32)
    h = jnp.maximum(h + b1_ref[...], 0.0)
    # Layer 2: Linear(32 -> 16) + ReLU
    h = jnp.dot(h, w2_ref[...], preferred_element_type=jnp.float32)
    h = jnp.maximum(h + b2_ref[...], 0.0)
    # Layer 3: Linear(16 -> 8) + ReLU
    h = jnp.dot(h, w3_ref[...], preferred_element_type=jnp.float32)
    h = jnp.maximum(h + b3_ref[...], 0.0)
    # Layer 4: Linear(8 -> 1) + sigmoid
    h = jnp.dot(h, w4_ref[...], preferred_element_type=jnp.float32)
    o_ref[...] = jax.nn.sigmoid(h + b4_ref[...]).astype(o_ref.dtype)


def dnn_forward(x, params, *, tb_max=2048):
    """x: [B, 30] float32. params: dict name -> (w [in, out], b [1, out])."""
    B, f_in = x.shape
    w1, b1 = params["fc1"]
    w2, b2 = params["fc2"]
    w3, b3 = params["fc3"]
    w4, b4 = params["fc4"]
    n_out = w4.shape[1]

    # Batch tile: single full-array block for small B (one grid step, no
    # per-step overhead); otherwise tb_max rows per block (must be mult. of 8).
    tb = B if B <= tb_max else tb_max
    n_blocks = pl.cdiv(B, tb)

    # Weights/biases: constant index_map -> block never changes, so Pallas
    # keeps them VMEM-resident instead of re-DMA-ing every grid step.
    def const(arr):
        return pl.BlockSpec(arr.shape, lambda i: (0,) * arr.ndim)

    return pl.pallas_call(
        dnn_kernel,
        out_shape=jax.ShapeDtypeStruct((B, n_out), jnp.float32),
        grid=(n_blocks,),
        in_specs=[pl.BlockSpec((tb, f_in), lambda i: (i, 0)),
                  const(w1), const(b1),
                  const(w2), const(b2),
                  const(w3), const(b3),
                  const(w4), const(b4)],
        out_specs=pl.BlockSpec((tb, n_out), lambda i: (i, 0)),
        compiler_params=pltpu.CompilerParams(
            dimension_semantics=("parallel",),       # shard batch over TCs on v7x
            vmem_limit_bytes=48 * 1024 * 1024,       # headroom under v7x's 64 MiB
        ),
    )(x, w1, b1, w2, b2, w3, b3, w4, b4)


def init_params(key, num_inputs=30, n_outputs=1):
    """Deterministic init mimicking nn.Linear's uniform(-1/sqrt(fan_in), 1/sqrt(fan_in))."""
    dims = [(num_inputs, 32), (32, 16), (16, 8), (8, n_outputs)]
    names = ["fc1", "fc2", "fc3", "fc4"]
    params = {}
    for name, (fan_in, fan_out) in zip(names, dims):
        key, kw, kb = jax.random.split(key, 3)
        bound = 1.0 / jnp.sqrt(jnp.float32(fan_in))
        # stored as [in, out] (transposed vs. PyTorch's [out, in]) so kernel does x @ W
        w = jax.random.uniform(kw, (fan_in, fan_out), jnp.float32, -bound, bound)
        b = jax.random.uniform(kb, (1, fan_out), jnp.float32, -bound, bound)
        params[name] = (w, b)
    return params


if __name__ == "__main__":
    key = jax.random.PRNGKey(0)
    key, kx = jax.random.split(key)
    NUM_INPUTS, N_OUTPUTS = 30, 1
    params = init_params(key, NUM_INPUTS, N_OUTPUTS)

    def reference(x):
        h = x
        for name in ["fc1", "fc2", "fc3"]:
            w, b = params[name]
            h = jnp.maximum(h @ w + b, 0.0)
        w, b = params["fc4"]
        return jax.nn.sigmoid(h @ w + b)

    # 1) Small batch: single full-array block path (one grid step).
    x_small = jax.random.normal(kx, (8, NUM_INPUTS), jnp.float32)
    out_small = jax.block_until_ready(dnn_forward(x_small, params))
    assert out_small.shape == (8, N_OUTPUTS), out_small.shape
    assert jnp.allclose(out_small, reference(x_small), atol=1e-5, rtol=1e-5), \
        "small-batch mismatch vs reference"

    # 2) Tiled batch path at small shapes: tb_max=32 -> 3 grid steps including a
    #    partial last block (exercises the pipelined + masked-write path).
    key, kx2 = jax.random.split(key)
    x_tiled = jax.random.normal(kx2, (80, NUM_INPUTS), jnp.float32)
    out_tiled = jax.block_until_ready(dnn_forward(x_tiled, params, tb_max=32))
    assert out_tiled.shape == (80, N_OUTPUTS), out_tiled.shape
    assert jnp.allclose(out_tiled, reference(x_tiled), atol=1e-5, rtol=1e-5), \
        "tiled-batch mismatch vs reference"

    print("KERNEL_OK")
</pallas_src>

<mosaic_0001>
module attributes {stable_mosaic.version = 11 : i64} {
  func.func @dnn_kernel(%arg0: i32, %arg1: memref<8x30xf32, #tpu.memory_space<vmem>>, %arg2: memref<30x32xf32, #tpu.memory_space<vmem>>, %arg3: memref<1x32xf32, #tpu.memory_space<vmem>>, %arg4: memref<32x16xf32, #tpu.memory_space<vmem>>, %arg5: memref<1x16xf32, #tpu.memory_space<vmem>>, %arg6: memref<16x8xf32, #tpu.memory_space<vmem>>, %arg7: memref<1x8xf32, #tpu.memory_space<vmem>>, %arg8: memref<8x1xf32, #tpu.memory_space<vmem>>, %arg9: memref<1x1xf32, #tpu.memory_space<vmem>>, %arg10: memref<8x1xf32, #tpu.memory_space<vmem>>) attributes {dimension_semantics = [#tpu.dimension_semantics<parallel>], iteration_bounds = array<i64: 1>, scalar_prefetch = 0 : i64, scratch_operands = 0 : i64, tpu.core_type = #tpu.core_type<tc>, window_params = [{transform_indices = @transform_0, window_bounds = array<i64: 8, 30>}, {pipeline_mode = #tpu.pipeline_mode<synchronous>, transform_indices = @transform_1, window_bounds = array<i64: 30, 32>}, {pipeline_mode = #tpu.pipeline_mode<synchronous>, transform_indices = @transform_2, window_bounds = array<i64: 1, 32>}, {pipeline_mode = #tpu.pipeline_mode<synchronous>, transform_indices = @transform_3, window_bounds = array<i64: 32, 16>}, {pipeline_mode = #tpu.pipeline_mode<synchronous>, transform_indices = @transform_4, window_bounds = array<i64: 1, 16>}, {pipeline_mode = #tpu.pipeline_mode<synchronous>, transform_indices = @transform_5, window_bounds = array<i64: 16, 8>}, {pipeline_mode = #tpu.pipeline_mode<synchronous>, transform_indices = @transform_6, window_bounds = array<i64: 1, 8>}, {pipeline_mode = #tpu.pipeline_mode<synchronous>, transform_indices = @transform_7, window_bounds = array<i64: 8, 1>}, {pipeline_mode = #tpu.pipeline_mode<synchronous>, transform_indices = @transform_8, window_bounds = array<i64: 1, 1>}, {transform_indices = @transform_9, window_bounds = array<i64: 8, 1>}]} {
    %c0 = arith.constant 0 : index
    %c0_0 = arith.constant 0 : index
    %0 = vector.load %arg1[%c0, %c0_0] : memref<8x30xf32, #tpu.memory_space<vmem>>, vector<8x30xf32>
    %c0_1 = arith.constant 0 : index
    %c0_2 = arith.constant 0 : index
    %1 = vector.load %arg2[%c0_1, %c0_2] : memref<30x32xf32, #tpu.memory_space<vmem>>, vector<30x32xf32>
    %cst = arith.constant dense<0.000000e+00> : vector<8x32xf32>
    %2 = tpu.matmul %0, %1, %cst {dimension_numbers = #tpu.dot_dimension_numbers<[1], [0], [0], [1], [0, 0, 1, 1], [], []>} : vector<8x30xf32>, vector<30x32xf32>, vector<8x32xf32> -> vector<8x32xf32>
    %c0_3 = arith.constant 0 : index
    %c0_4 = arith.constant 0 : index
    %3 = vector.load %arg3[%c0_3, %c0_4] : memref<1x32xf32, #tpu.memory_space<vmem>>, vector<1x32xf32>
    %4 = vector.broadcast %3 : vector<1x32xf32> to vector<8x32xf32>
    %5 = arith.addf %2, %4 : vector<8x32xf32>
    %cst_5 = arith.constant 0.000000e+00 : f32
    %6 = vector.broadcast %cst_5 : f32 to vector<8x32xf32>
    %7 = arith.maximumf %5, %6 : vector<8x32xf32>
    %c0_6 = arith.constant 0 : index
    %c0_7 = arith.constant 0 : index
    %8 = vector.load %arg4[%c0_6, %c0_7] : memref<32x16xf32, #tpu.memory_space<vmem>>, vector<32x16xf32>
    %cst_8 = arith.constant dense<0.000000e+00> : vector<8x16xf32>
    %9 = tpu.matmul %7, %8, %cst_8 {dimension_numbers = #tpu.dot_dimension_numbers<[1], [0], [0], [1], [0, 0, 1, 1], [], []>} : vector<8x32xf32>, vector<32x16xf32>, vector<8x16xf32> -> vector<8x16xf32>
    %c0_9 = arith.constant 0 : index
    %c0_10 = arith.constant 0 : index
    %10 = vector.load %arg5[%c0_9, %c0_10] : memref<1x16xf32, #tpu.memory_space<vmem>>, vector<1x16xf32>
    %11 = vector.broadcast %10 : vector<1x16xf32> to vector<8x16xf32>
    %12 = arith.addf %9, %11 : vector<8x16xf32>
    %cst_11 = arith.constant 0.000000e+00 : f32
    %13 = vector.broadcast %cst_11 : f32 to vector<8x16xf32>
    %14 = arith.maximumf %12, %13 : vector<8x16xf32>
    %c0_12 = arith.constant 0 : index
    %c0_13 = arith.constant 0 : index
    %15 = vector.load %arg6[%c0_12, %c0_13] : memref<16x8xf32, #tpu.memory_space<vmem>>, vector<16x8xf32>
    %cst_14 = arith.constant dense<0.000000e+00> : vector<8x8xf32>
    %16 = tpu.matmul %14, %15, %cst_14 {dimension_numbers = #tpu.dot_dimension_numbers<[1], [0], [0], [1], [0, 0, 1, 1], [], []>} : vector<8x16xf32>, vector<16x8xf32>, vector<8x8xf32> -> vector<8x8xf32>
    %c0_15 = arith.constant 0 : index
    %c0_16 = arith.constant 0 : index
    %17 = vector.load %arg7[%c0_15, %c0_16] : memref<1x8xf32, #tpu.memory_space<vmem>>, vector<1x8xf32>
    %18 = vector.broadcast %17 : vector<1x8xf32> to vector<8x8xf32>
    %19 = arith.addf %16, %18 : vector<8x8xf32>
    %cst_17 = arith.constant 0.000000e+00 : f32
    %20 = vector.broadcast %cst_17 : f32 to vector<8x8xf32>
    %21 = arith.maximumf %19, %20 : vector<8x8xf32>
    %c0_18 = arith.constant 0 : index
    %c0_19 = arith.constant 0 : index
    %22 = vector.load %arg8[%c0_18, %c0_19] : memref<8x1xf32, #tpu.memory_space<vmem>>, vector<8x1xf32>
    %cst_20 = arith.constant dense<0.000000e+00> : vector<8x1xf32>
    %23 = tpu.matmul %21, %22, %cst_20 {dimension_numbers = #tpu.dot_dimension_numbers<[1], [0], [0], [1], [0, 0, 1, 1], [], []>} : vector<8x8xf32>, vector<8x1xf32>, vector<8x1xf32> -> vector<8x1xf32>
    %c0_21 = arith.constant 0 : index
    %c0_22 = arith.constant 0 : index
    %24 = vector.load %arg9[%c0_21, %c0_22] : memref<1x1xf32, #tpu.memory_space<vmem>>, vector<1x1xf32>
    %25 = vector.broadcast %24 : vector<1x1xf32> to vector<8x1xf32>
    %26 = arith.addf %23, %25 : vector<8x1xf32>
    %27 = arith.negf %26 : vector<8x1xf32>
    %28 = math.exp %27 : vector<8x1xf32>
    %cst_23 = arith.constant 1.000000e+00 : f32
    %29 = vector.broadcast %cst_23 : f32 to vector<8x1xf32>
    %30 = arith.addf %29, %28 : vector<8x1xf32>
    %31 = arith.divf %29, %30 : vector<8x1xf32>
    %c0_24 = arith.constant 0 : index
    %c0_25 = arith.constant 0 : index
    %32 = vector.load %arg10[%c0_24, %c0_25] : memref<8x1xf32, #tpu.memory_space<vmem>>, vector<8x1xf32>
    tpu.vector_store %arg10[%c0_24, %c0_25], %31 {strides = array<i32>} : memref<8x1xf32, #tpu.memory_space<vmem>>, vector<8x1xf32>,
    return
  }
  func.func @transform_0(%arg0: i32) -> (i32, i32) {
    %c0_i32 = arith.constant 0 : i32
    %c0_i32_0 = arith.constant 0 : i32
    return %arg0, %c0_i32 : i32, i32
  }
  func.func @transform_1(%arg0: i32) -> (i32, i32) {
    %c0_i32 = arith.constant 0 : i32
    %c0_i32_0 = arith.constant 0 : i32
    %c0_i32_1 = arith.constant 0 : i32
    return %c0_i32, %c0_i32_0 : i32, i32
  }
  func.func @transform_2(%arg0: i32) -> (i32, i32) {
    %c0_i32 = arith.constant 0 : i32
    %c0_i32_0 = arith.constant 0 : i32
    %c0_i32_1 = arith.constant 0 : i32
    return %c0_i32, %c0_i32_0 : i32, i32
  }
  func.func @transform_3(%arg0: i32) -> (i32, i32) {
    %c0_i32 = arith.constant 0 : i32
    %c0_i32_0 = arith.constant 0 : i32
    %c0_i32_1 = arith.constant 0 : i32
    return %c0_i32, %c0_i32_0 : i32, i32
  }
  func.func @transform_4(%arg0: i32) -> (i32, i32) {
    %c0_i32 = arith.constant 0 : i32
    %c0_i32_0 = arith.constant 0 : i32
    %c0_i32_1 = arith.constant 0 : i32
    return %c0_i32, %c0_i32_0 : i32, i32
  }
  func.func @transform_5(%arg0: i32) -> (i32, i32) {
    %c0_i32 = arith.constant 0 : i32
    %c0_i32_0 = arith.constant 0 : i32
    %c0_i32_1 = arith.constant 0 : i32
    return %c0_i32, %c0_i32_0 : i32, i32
  }
  func.func @transform_6(%arg0: i32) -> (i32, i32) {
    %c0_i32 = arith.constant 0 : i32
    %c0_i32_0 = arith.constant 0 : i32
    %c0_i32_1 = arith.constant 0 : i32
    return %c0_i32, %c0_i32_0 : i32, i32
  }
  func.func @transform_7(%arg0: i32) -> (i32, i32) {
    %c0_i32 = arith.constant 0 : i32
    %c0_i32_0 = arith.constant 0 : i32
    %c0_i32_1 = arith.constant 0 : i32
    return %c0_i32, %c0_i32_0 : i32, i32
  }
  func.func @transform_8(%arg0: i32) -> (i32, i32) {
    %c0_i32 = arith.constant 0 : i32
    %c0_i32_0 = arith.constant 0 : i32
    %c0_i32_1 = arith.constant 0 : i32
    return %c0_i32, %c0_i32_0 : i32, i32
  }
  func.func @transform_9(%arg0: i32) -> (i32, i32) {
    %c0_i32 = arith.constant 0 : i32
    %c0_i32_0 = arith.constant 0 : i32
    return %arg0, %c0_i32 : i32, i32
  }
}

</mosaic_0001>

<bundles_post_ra>
// kernel: tpu_custom_call.1
= control target key start
LH: loop header
LB: loop body
LE: loop exit
PB: predicated region body
PF: predicated region fallthrough
CT: control target
= control target key end

     0   :  { %v472_v0 = vmov 0.0|0.0   ;;  %vm50_vm0 = vcmask 1045504   ;;  %vm473_vm1 = vmmov 0   ;;  %v474_v6 = vmov 0.0   ;;  %s581_s1 = inlined_call_operand.vmem [shape: f32[30,32], index: 1, kind: input, shape index: {}]   ;;  %s582_s3 = inlined_call_operand.vmem [shape: f32[32,16], index: 3, kind: input, shape index: {}]   ;;  %s583_s0 = inlined_call_operand.vmem [shape: f32[8,30], index: 0, kind: input, shape index: {}]   ;;  %s584_s2 = inlined_call_operand.vmem [shape: f32[1,32], index: 2, kind: input, shape index: {}]   ;;  %s585_s5 = inlined_call_operand.vmem [shape: f32[16,8], index: 5, kind: input, shape index: {}]   ;;  %s586_s4 = inlined_call_operand.vmem [shape: f32[1,16], index: 4, kind: input, shape index: {}]   ;;  %s587_s7 = inlined_call_operand.vmem [shape: f32[8,1], index: 7, kind: input, shape index: {}]   ;;  %s588_s8 = inlined_call_operand.<no memory space> [shape: f32[1,1], index: 8, kind: input, shape index: {}]   ;;  %s589_s6 = inlined_call_operand.vmem [shape: f32[1,8], index: 6, kind: input, shape index: {}]   ;;  %s590_s9 = inlined_call_operand.vmem [shape: f32[8,1], index: 9, kind: output, shape index: {}]  }
   0x1   :  { %448 = vmatprep.subr.bf16.mxu0 %v472_v0  ;;  %v35_v1 = vld [vmem:[%s581_s1] sm:$0xff]  ;;  %v36_v2 = vld [vmem:[%s581_s1 + $0x8] sm:$0xff]  ;;  %v37_v3 = vld [vmem:[%s581_s1 + $0x10] sm:$0xff]  ;;  %455 = vmatprep.subr.bf16.mxu1 %v472_v0  ;;  %vm475_vm2 = vmmov 1   ;;  %vm46_vm4 = vcmask 244736   ;;  %vm136_vm5 = vcmask 261120   ;;  %v14_v29 = vstv %s588_s8 }
   0x2   :  { %v449_v4 = vpack.c.bf16 %v36_v2, %v35_v1  ;;  %v38_v5 = vld [vmem:[%s581_s1 + $0x18] sm:$0x3f]  ;;  %422 = vmatprep.mubr.msk.f32.mxu0 %vm473_vm1, %v474_v6  ;;  %433 = vmatprep.mubr.msk.f32.mxu1 %vm473_vm1, %v474_v6  ;;  %v125_v7 = vld [vmem:[%s582_s3] sm:$0xff]  ;;  %v126_v8 = vld [vmem:[%s582_s3 + $0x8] sm:$0xff]  ;;  %vm220_vm6 = vcmask 130048   ;;  %vm303_vm7 = vcmask 64512  }
   0x3   :  { %v452_v9 = vpack.c.bf16 %v38_v5, %v37_v3  ;;  %v456_v10 = vpack.c.bf16 %v126_v8, %v125_v7  ;;  %vm453_vm3 = vmpackc.low %vm50_vm0, %vm475_vm2  ;;  %v34_v11 = vld [vmem:[%s583_s0] sm:$0xff]  ;;  %v127_v12 = vld [vmem:[%s582_s3 + $0x10] sm:$0xff]  ;;  %15 = vst [vmem:[#allocation2] sm:$0x1] %v14_v29  ;;  %vm383_vm8 = vcmask 7168  }
   0x4   :  { %450 = vmatpush3.bf16.msra.mxu0 %v449_v4  ;;  %v128_v13 = vld [vmem:[%s582_s3 + $0x18] sm:$0xff]  ;;  %v389_v15 = vld [vmem:[%s584_s2] ss:$0 sm:$0xff]  ;;  %v212_v21 = vld [vmem:[%s585_s5 + $0x8] sm:$0xff] }
   0x5   :  { %451 = vmatprep.subr.bf16.mxu0 %v472_v0  ;;  %457 = vmatpush3.bf16.msra.mxu1 %v456_v10  ;;  %v459_v14 = vpack.c.bf16 %v128_v13, %v127_v12  ;;  %v211_v20 = vld [vmem:[%s585_s5] sm:$0xff] }
   0x6   :  { %458 = vmatprep.subr.bf16.mxu1 %v472_v0  ;;  %v462_v22 = vpack.c.bf16 %v212_v21, %v211_v20  ;;  %v392_v23 = vld [vmem:[%s586_s4] ss:$0 sm:$0xff] }
   0x7   :  { %v295_v28 = vld [vmem:[%s587_s7] sm:$0xff] }
   0x8   :  { %454 = vmatpush3.bf16.msk.msra.mxu0 %vm453_vm3, %v452_v9  ;;  %v394_v30 = vld [vmem:[%s589_s6] ss:$0 sm:$0xff] }
   0x9   :  { %461 = vmatprep.subr.bf16.mxu0 %v472_v0  ;;  %460 = vmatpush3.bf16.msra.mxu1 %v459_v14 }
   0xa   :  { %443 = vmatprep.subr.mxu1 %v474_v6  ;;  %v396_v35 = vld [vmem:[#allocation2] ss:$0 sm:$0xff] }
   0xb   :  { %423 = vmatmul.mubr.msk.f32.vlgmr.msra.gmra.mrb[0].mxu0 %vm46_vm4, %v34_v11 }
   0xc   :  { %440 = vmatprep.mubr.msk.f32.mxu0 %vm473_vm1, %v474_v6  ;;  %463 = vmatpush3.bf16.msra.mxu0 %v462_v22 }
  0xde   :  { %v120_v16 = vpop.f32.mrb[0].mxu0 }
  0xdf   :  { %v121_v17 = vadd.f32 %v389_v15, %v120_v16  ;;  %v424_v18 = vpop.f32.mrb[1].mxu0 }
  0xe1   :  { %v124_v19 = vmax.f32 %v121_v17, 0.0 }
  0xe3   :  { %434 = vmatmul.mubr.msk.f32.vlgmr.msra.gmra.mrb[0].mxu1 %vm136_vm5, %v124_v19 }
  0xe4   :  { %445 = vmatprep.mubr.msk.f32.mxu1 %vm473_vm1, %v474_v6  ;;  %444 = vmatpush3.msra.mxu1 %v295_v28 }
 0x1b6   :  { %v206_v24 = vpop.f32.mrb[0].mxu1 }
 0x1b7   :  { %v207_v25 = vadd.f32 %v392_v23, %v206_v24  ;;  %v435_v26 = vpop.f32.mrb[1].mxu1 }
 0x1b9   :  { %v210_v27 = vmax.f32 %v207_v25, 0.0 }
 0x1bb   :  { %441 = vmatmul.mubr.msk.f32.vlgmr.msra.gmra.mrb[2].mxu0 %vm220_vm6, %v210_v27 }
 0x28e   :  { %v290_v31 = vpop.f32.mrb[2].mxu0 }
 0x28f   :  { %v291_v32 = vadd.f32 %v394_v30, %v290_v31  ;;  %v442_v33 = vpop.f32.mrb[3].mxu0 }
 0x291   :  { %v294_v34 = vmax.f32 %v291_v32, 0.0 }
 0x293   :  { %446 = vmatmul.mubr.msk.f32.vlgmr.msra.gmra.mrb[2].mxu1 %vm303_vm7, %v294_v34 }
 0x366   :  { %v373_v36 = vpop.f32.mrb[2].mxu1 }
 0x367   :  { %v374_v37 = vadd.f32 %v396_v35, %v373_v36  ;;  %v447_v38 = vpop.f32.mrb[3].mxu1 }
 0x369   :  { %v398_v39 = vmul.f32 -1.442695, %v374_v37 }
 0x36b   :  { %468 = vpow2.f32 %v398_v39 }
 0x375   :  { %v469_v40 = vpop.eup %468 }
 0x376   :  { %v380_v41 = vadd.f32 1.0, %v469_v40 }
 0x378   :  { %470 = vrcp.f32 %v380_v41 }
 0x382   :  { %v471_v42 = vpop.eup %470 }
 0x383   :  { %384 = vst.msk [vmem:[%s590_s9] sm:$0xff] %vm383_vm8, %v471_v42 }

</bundles_post_ra>
